<compile_context>
chip_gen: v6e
topology: v6e:2x2x1
jax: 0.10.0
libtpu: 0.0.40
codegen_flags: <defaults>
</compile_context>

<pallas_src>
import functools

import jax
import jax.numpy as jnp
from jax.experimental import pallas as pl
from jax.experimental.pallas import tpu as pltpu

EPS = 1e-8  # matches torch.nn.CosineSimilarity default eps


def _round_up(a, b):
    return (a + b - 1) // b * b


def _cdiv(a, b):
    return (a + b - 1) // b


def _pick_tile(n):
    """Lane-dense output tile for a batch-like dim of size n."""
    npad = _round_up(n, 128)
    if npad % 512 == 0 and npad >= 1024:
        return 512
    if npad % 256 == 0 and npad >= 512:
        return 256
    return 128


# ----------------------------------------------------------------------------
# Fused kernel: Gram accumulation + per-row sum-of-squares + norm/temp scaling.
# ----------------------------------------------------------------------------
def _cosine_sim_kernel(x_ref, y_ref, o_ref, ssq_x_ref, ssq_y_ref, *, inv_temp):
    k = pl.program_id(2)
    nk = pl.num_programs(2)

    x = x_ref[...]          # (tm, tk)
    y = y_ref[...]          # (tn, tk)

    # Gram tile: contract the last axes of both tiles (NT form, no explicit
    # transpose of the y tile); bf16 operands stay bf16 on the MXU.
    dot = jax.lax.dot_general(
        x, y,
        dimension_numbers=(((1,), (1,)), ((), ())),
        preferred_element_type=jnp.float32)                       # (tm, tn)

    # x-row sum of squares: natural (tm, 1) sublane layout, f32 accumulation.
    xsq = x * x
    ssq_x = jnp.sum(xsq.astype(jnp.float32), axis=-1, keepdims=True)  # (tm,1)

    # y-row sum of squares produced directly in (1, tn) lane layout via a
    # small ones @ (y*y)^T dot on the MXU (avoids any in-kernel relayout).
    ysq = y * y
    ones = jnp.ones((8, ysq.shape[-1]), dtype=ysq.dtype)
    ssq_y = jax.lax.dot_general(
        ones, ysq,
        dimension_numbers=(((1,), (1,)), ((), ())),
        preferred_element_type=jnp.float32)[0:1, :]               # (1, tn)

    @pl.when(k == 0)
    def _():
        o_ref[...] = dot
        ssq_x_ref[...] = ssq_x
        ssq_y_ref[...] = ssq_y

    @pl.when(k > 0)
    def _():
        o_ref[...] += dot
        ssq_x_ref[...] += ssq_x
        ssq_y_ref[...] += ssq_y

    @pl.when(k == nk - 1)
    def _():
        # Per-operand eps clamp (differs from torch's max(||x||*||y||, eps)
        # only for degenerate sub-eps-norm rows).  Padded (zero) rows give
        # dot == 0 -> output 0 and are sliced off in the wrapper.
        inv_x = jax.lax.rsqrt(
            jnp.maximum(ssq_x_ref[...], EPS * EPS)) * inv_temp     # (tm, 1)
        inv_y = jax.lax.rsqrt(
            jnp.maximum(ssq_y_ref[...], EPS * EPS))                # (1, tn)
        o_ref[...] = o_ref[...] * inv_x * inv_y


def similarity(x, y, temp, *, operand_dtype=None):
    """Cosine similarity along last dim divided by temp.

    x: (B, 1, H), y: (1, By, H)  (SimCSE broadcast pattern) -> (B, By) f32.
    operand_dtype: optional dtype (e.g. jnp.bfloat16) for the MXU operands;
      None keeps the input dtype (exact f32 semantics for f32 inputs).
    """
    assert x.ndim == 3 and y.ndim == 3
    B, H = x.shape[0], x.shape[2]
    By = y.shape[1]
    assert x.shape == (B, 1, H) and y.shape == (1, By, H)
    assert x.dtype == y.dtype

    x2 = x.reshape(B, H)       # metadata-only reshapes in the wrapper
    y2 = y.reshape(By, H)
    if operand_dtype is not None and x2.dtype != jnp.dtype(operand_dtype):
        x2 = x2.astype(operand_dtype)
        y2 = y2.astype(operand_dtype)

    # ---- tile selection -----------------------------------------------------
    tm, tn = _pick_tile(B), _pick_tile(By)
    bp, byp = _round_up(B, tm), _round_up(By, tn)
    # Guarantee >= 2 parallel (i, j) blocks when possible (v7x: 2 TensorCores).
    while (bp // tm) * (byp // tn) < 2 and (tm > 128 or tn > 128):
        if tm >= tn and tm > 128:
            tm //= 2
        else:
            tn //= 2
        bp, byp = _round_up(B, tm), _round_up(By, tn)

    # Contraction chunk: as large as possible (fewer k steps / RMW passes),
    # capped so the largest tiles still fit VMEM comfortably on v7x (64 MiB).
    hp0 = _round_up(H, 128)
    tk_cap = 1024 if max(tm, tn) >= 512 else 2048
    nk = _cdiv(hp0, tk_cap)
    tk = _round_up(_cdiv(hp0, nk), 128)
    hp = tk * nk

    # ---- padding (skipped entirely for already-aligned shapes) --------------
    if (bp, hp) != (B, H):
        x2 = jnp.pad(x2, ((0, bp - B), (0, hp - H)))
    if (byp, hp) != (By, H):
        y2 = jnp.pad(y2, ((0, byp - By), (0, hp - H)))

    # ---- explicit VMEM budget ------------------------------------------------
    itemsize = jnp.dtype(x2.dtype).itemsize
    vmem_need = (2 * (tm + tn) * tk * itemsize     # double-buffered x/y tiles
                 + 2 * tm * tn * 4                 # resident f32 output block
                 + (tm * 128 + 8 * tn) * 4)        # padded (tm,1)/(1,tn) scratch
    vmem_limit = int(min(56 * 1024 * 1024,
                         max(32 * 1024 * 1024, 3 * vmem_need)))

    kernel = functools.partial(_cosine_sim_kernel, inv_temp=1.0 / float(temp))
    out = pl.pallas_call(
        kernel,
        out_shape=jax.ShapeDtypeStruct((bp, byp), jnp.float32),
        grid_spec=pltpu.PrefetchScalarGridSpec(
            num_scalar_prefetch=0,
            grid=(bp // tm, byp // tn, nk),
            in_specs=[
                pl.BlockSpec((tm, tk), lambda i, j, k: (i, k)),
                pl.BlockSpec((tn, tk), lambda i, j, k: (j, k)),
            ],
            out_specs=pl.BlockSpec((tm, tn), lambda i, j, k: (i, j)),
            scratch_shapes=[
                pltpu.VMEM((tm, 1), jnp.float32),   # ssq_x accumulator
                pltpu.VMEM((1, tn), jnp.float32),   # ssq_y accumulator
            ],
        ),
        compiler_params=pltpu.CompilerParams(
            dimension_semantics=("parallel", "parallel", "arbitrary"),
            vmem_limit_bytes=vmem_limit),
    )(x2, y2)

    return out[:B, :By]


def _reference(x, y, temp):
    # Pure-JAX reference mirroring torch cosine_similarity semantics.
    num = jnp.sum(x * y, axis=-1)
    nx = jnp.sqrt(jnp.sum(x * x, axis=-1))
    ny = jnp.sqrt(jnp.sum(y * y, axis=-1))
    return num / jnp.maximum(nx * ny, EPS) / temp


if __name__ == "__main__":
    root = jax.random.PRNGKey(0)

    def run_case(tag, B, By, H, dtype, temp, atol, rtol, operand_dtype=None):
        kx, ky = jax.random.split(jax.random.fold_in(root, B * 7919 + H))
        x = jax.random.normal(kx, (B, 1, H), dtype=jnp.float32).astype(dtype)
        y = jax.random.normal(ky, (1, By, H), dtype=jnp.float32).astype(dtype)
        out = jax.block_until_ready(
            similarity(x, y, temp, operand_dtype=operand_dtype))
        ref = _reference(x.astype(jnp.float32), y.astype(jnp.float32), temp)
        assert out.shape == (B, By)
        err = float(jnp.max(jnp.abs(out - ref)))
        assert jnp.allclose(out, ref, atol=atol, rtol=rtol), (
            f"[{tag}] max abs err {err}")

    temp = 0.05
    # 1) Required small case: f32, single tile, single k step.
    run_case("small-f32", 8, 8, 32, jnp.float32, temp, 1e-4, 1e-4)
    # 2) Ragged multi-tile, multi-k (hp//tk == 2) f32 path.
    run_case("ragged-f32", 136, 200, 2500, jnp.float32, temp, 1e-3, 1e-3)
    # 2b) Same shapes with f32 inputs downcast to bf16 MXU operands.
    run_case("ragged-bf16ops", 136, 200, 2500, jnp.float32, temp, 1e-1, 5e-2,
             operand_dtype=jnp.bfloat16)
    # 3) Native bf16 inputs (MXU-native path), loose tolerance.
    run_case("small-bf16", 8, 8, 64, jnp.bfloat16, temp, 3.5e-1, 5e-2)

    print("KERNEL_OK")
</pallas_src>

<mosaic_0001>
module attributes {stable_mosaic.version = 11 : i64} {
  func.func @_cosine_sim_kernel(%arg0: i32, %arg1: i32, %arg2: i32, %arg3: memref<128x128xf32, #tpu.memory_space<vmem>>, %arg4: memref<128x128xf32, #tpu.memory_space<vmem>>, %arg5: memref<128x128xf32, #tpu.memory_space<vmem>>, %arg6: memref<128x1xf32, #tpu.memory_space<vmem>>, %arg7: memref<1x128xf32, #tpu.memory_space<vmem>>) attributes {dimension_semantics = [#tpu.dimension_semantics<parallel>, #tpu.dimension_semantics<parallel>, #tpu.dimension_semantics<arbitrary>], iteration_bounds = array<i64: 1, 1, 1>, scalar_prefetch = 0 : i64, scratch_operands = 2 : i64, tpu.core_type = #tpu.core_type<tc>, window_params = [{transform_indices = @transform_0, window_bounds = array<i64: 128, 128>}, {transform_indices = @transform_1, window_bounds = array<i64: 128, 128>}, {transform_indices = @transform_2, window_bounds = array<i64: 128, 128>}]} {
    %c0 = arith.constant 0 : index
    %c0_0 = arith.constant 0 : index
    %0 = vector.load %arg3[%c0, %c0_0] : memref<128x128xf32, #tpu.memory_space<vmem>>, vector<128x128xf32>
    %c0_1 = arith.constant 0 : index
    %c0_2 = arith.constant 0 : index
    %1 = vector.load %arg4[%c0_1, %c0_2] : memref<128x128xf32, #tpu.memory_space<vmem>>, vector<128x128xf32>
    %cst = arith.constant dense<0.000000e+00> : vector<128x128xf32>
    %2 = tpu.matmul %0, %1, %cst {dimension_numbers = #tpu.dot_dimension_numbers<[1], [1], [0], [0], [0, 0, 1, 0], [], []>} : vector<128x128xf32>, vector<128x128xf32>, vector<128x128xf32> -> vector<128x128xf32>
    %3 = arith.mulf %0, %0 : vector<128x128xf32>
    %cst_3 = arith.constant dense<0.000000e+00> : vector<128xf32>
    %4 = vector.multi_reduction <add>, %3, %cst_3 [1] : vector<128x128xf32> to vector<128xf32>
    %5 = vector.shape_cast %4 : vector<128xf32> to vector<128x1xf32>
    %6 = arith.mulf %1, %1 : vector<128x128xf32>
    %cst_4 = arith.constant 1.000000e+00 : f32
    %7 = vector.broadcast %cst_4 : f32 to vector<8x128xf32>
    %cst_5 = arith.constant dense<0.000000e+00> : vector<8x128xf32>
    %8 = tpu.matmul %7, %6, %cst_5 {dimension_numbers = #tpu.dot_dimension_numbers<[1], [1], [0], [0], [0, 0, 1, 0], [], []>} : vector<8x128xf32>, vector<128x128xf32>, vector<8x128xf32> -> vector<8x128xf32>
    %9 = vector.extract_strided_slice %8 {offsets = [0, 0], sizes = [1, 128], strides = [1, 1]} : vector<8x128xf32> to vector<1x128xf32>
    %c0_i32 = arith.constant 0 : i32
    %10 = arith.cmpi eq, %arg2, %c0_i32 : i32
    %11 = arith.extui %10 : i1 to i32
    %c0_i32_6 = arith.constant 0 : i32
    %12 = arith.cmpi ne, %11, %c0_i32_6 : i32
    scf.if %12 {
      %c0_11 = arith.constant 0 : index
      %c0_12 = arith.constant 0 : index
      %19 = vector.load %arg5[%c0_11, %c0_12] : memref<128x128xf32, #tpu.memory_space<vmem>>, vector<128x128xf32>
      tpu.vector_store %arg5[%c0_11, %c0_12], %2 {strides = array<i32>} : memref<128x128xf32, #tpu.memory_space<vmem>>, vector<128x128xf32>,
      %c0_13 = arith.constant 0 : index
      %c0_14 = arith.constant 0 : index
      %20 = vector.load %arg6[%c0_13, %c0_14] : memref<128x1xf32, #tpu.memory_space<vmem>>, vector<128x1xf32>
      tpu.vector_store %arg6[%c0_13, %c0_14], %5 {strides = array<i32>} : memref<128x1xf32, #tpu.memory_space<vmem>>, vector<128x1xf32>,
      %c0_15 = arith.constant 0 : index
      %c0_16 = arith.constant 0 : index
      %21 = vector.load %arg7[%c0_15, %c0_16] : memref<1x128xf32, #tpu.memory_space<vmem>>, vector<1x128xf32>
      tpu.vector_store %arg7[%c0_15, %c0_16], %9 {strides = array<i32>} : memref<1x128xf32, #tpu.memory_space<vmem>>, vector<1x128xf32>,
    } else {
    }
    %c0_i32_7 = arith.constant 0 : i32
    %13 = arith.cmpi sgt, %arg2, %c0_i32_7 : i32
    %14 = arith.extui %13 : i1 to i32
    %c0_i32_8 = arith.constant 0 : i32
    %15 = arith.cmpi ne, %14, %c0_i32_8 : i32
    scf.if %15 {
      %c0_11 = arith.constant 0 : index
      %c0_12 = arith.constant 0 : index
      %19 = vector.load %arg5[%c0_11, %c0_12] : memref<128x128xf32, #tpu.memory_space<vmem>>, vector<128x128xf32>
      %20 = arith.addf %19, %2 : vector<128x128xf32>
      %c0_13 = arith.constant 0 : index
      %c0_14 = arith.constant 0 : index
      %21 = vector.load %arg5[%c0_13, %c0_14] : memref<128x128xf32, #tpu.memory_space<vmem>>, vector<128x128xf32>
      tpu.vector_store %arg5[%c0_13, %c0_14], %20 {strides = array<i32>} : memref<128x128xf32, #tpu.memory_space<vmem>>, vector<128x128xf32>,
      %c0_15 = arith.constant 0 : index
      %c0_16 = arith.constant 0 : index
      %22 = vector.load %arg6[%c0_15, %c0_16] : memref<128x1xf32, #tpu.memory_space<vmem>>, vector<128x1xf32>
      %23 = arith.addf %22, %5 : vector<128x1xf32>
      %c0_17 = arith.constant 0 : index
      %c0_18 = arith.constant 0 : index
      %24 = vector.load %arg6[%c0_17, %c0_18] : memref<128x1xf32, #tpu.memory_space<vmem>>, vector<128x1xf32>
      tpu.vector_store %arg6[%c0_17, %c0_18], %23 {strides = array<i32>} : memref<128x1xf32, #tpu.memory_space<vmem>>, vector<128x1xf32>,
      %c0_19 = arith.constant 0 : index
      %c0_20 = arith.constant 0 : index
      %25 = vector.load %arg7[%c0_19, %c0_20] : memref<1x128xf32, #tpu.memory_space<vmem>>, vector<1x128xf32>
      %26 = arith.addf %25, %9 : vector<1x128xf32>
      %c0_21 = arith.constant 0 : index
      %c0_22 = arith.constant 0 : index
      %27 = vector.load %arg7[%c0_21, %c0_22] : memref<1x128xf32, #tpu.memory_space<vmem>>, vector<1x128xf32>
      tpu.vector_store %arg7[%c0_21, %c0_22], %26 {strides = array<i32>} : memref<1x128xf32, #tpu.memory_space<vmem>>, vector<1x128xf32>,
    } else {
    }
    %c0_i32_9 = arith.constant 0 : i32
    %16 = arith.cmpi eq, %arg2, %c0_i32_9 : i32
    %17 = arith.extui %16 : i1 to i32
    %c0_i32_10 = arith.constant 0 : i32
    %18 = arith.cmpi ne, %17, %c0_i32_10 : i32
    scf.if %18 {
      %c0_11 = arith.constant 0 : index
      %c0_12 = arith.constant 0 : index
      %19 = vector.load %arg6[%c0_11, %c0_12] : memref<128x1xf32, #tpu.memory_space<vmem>>, vector<128x1xf32>
      %cst_13 = arith.constant 1.000000e-16 : f32
      %20 = vector.broadcast %cst_13 : f32 to vector<128x1xf32>
      %21 = arith.maximumf %19, %20 : vector<128x1xf32>
      %22 = math.rsqrt %21 : vector<128x1xf32>
      %cst_14 = arith.constant 2.000000e+01 : f32
      %23 = vector.broadcast %cst_14 : f32 to vector<128x1xf32>
      %24 = arith.mulf %22, %23 : vector<128x1xf32>
      %c0_15 = arith.constant 0 : index
      %c0_16 = arith.constant 0 : index
      %25 = vector.load %arg7[%c0_15, %c0_16] : memref<1x128xf32, #tpu.memory_space<vmem>>, vector<1x128xf32>
      %cst_17 = arith.constant 1.000000e-16 : f32
      %26 = vector.broadcast %cst_17 : f32 to vector<1x128xf32>
      %27 = arith.maximumf %25, %26 : vector<1x128xf32>
      %28 = math.rsqrt %27 : vector<1x128xf32>
      %c0_18 = arith.constant 0 : index
      %c0_19 = arith.constant 0 : index
      %29 = vector.load %arg5[%c0_18, %c0_19] : memref<128x128xf32, #tpu.memory_space<vmem>>, vector<128x128xf32>
      %30 = vector.broadcast %24 : vector<128x1xf32> to vector<128x128xf32>
      %31 = arith.mulf %29, %30 : vector<128x128xf32>
      %32 = vector.broadcast %28 : vector<1x128xf32> to vector<128x128xf32>
      %33 = arith.mulf %31, %32 : vector<128x128xf32>
      %c0_20 = arith.constant 0 : index
      %c0_21 = arith.constant 0 : index
      %34 = vector.load %arg5[%c0_20, %c0_21] : memref<128x128xf32, #tpu.memory_space<vmem>>, vector<128x128xf32>
      tpu.vector_store %arg5[%c0_20, %c0_21], %33 {strides = array<i32>} : memref<128x128xf32, #tpu.memory_space<vmem>>, vector<128x128xf32>,
    } else {
    }
    return
  }
  func.func @transform_0(%arg0: i32, %arg1: i32, %arg2: i32) -> (i32, i32) {
    %c0_i32 = arith.constant 0 : i32
    return %arg0, %arg2 : i32, i32
  }
  func.func @transform_1(%arg0: i32, %arg1: i32, %arg2: i32) -> (i32, i32) {
    %c0_i32 = arith.constant 0 : i32
    return %arg1, %arg2 : i32, i32
  }
  func.func @transform_2(%arg0: i32, %arg1: i32, %arg2: i32) -> (i32, i32) {
    %c0_i32 = arith.constant 0 : i32
    return %arg0, %arg1 : i32, i32
  }
}

</mosaic_0001>

<bundles_post_ra>
// kernel: tpu_custom_call.1
= control target key start
LH: loop header
LB: loop body
LE: loop exit
PB: predicated region body
PF: predicated region fallthrough
CT: control target
= control target key end

     0   :  { %7 = vsyncpa [#allocation5], 0  ;;  %s1150_s0 = inlined_call_operand.hbm [shape: f32[128,128], index: 0, kind: input, shape index: {}]   ;;  %s1151_s1 = inlined_call_operand.hbm [shape: f32[128,128], index: 1, kind: input, shape index: {}]   ;;  %s1152_s2 = inlined_call_operand.hbm [shape: f32[128,128], index: 2, kind: output, shape index: {}]  }
   0x1   :  { %8 = vsyncpa [#allocation8], 0 }
   0x2   :  { %9 = vsyncpa [#allocation6], 0  ;;  %s982_s9 = smov [#allocation4]  }
   0x3   :  { %s15_s10 = sshll.u32 %s982_s9, 4  ;;  %s16_s10 = int_to_ptr.vmem [resolvable:$true] %s15_s10 }
   0x4   :  { %s924_s11 = scalar_lea.vmem %s16_s10, 2048  ;;  %p929_p1 = scmp.lt.s32.totalorder %s16_s10, %s16_s10 }
   0x5   :  { %p925_p0 = scmp.ne.s32.totalorder %s16_s10, %s924_s11  ;;  %p930_p2 = scmp.lt.s32.totalorder %s924_s11, %s924_s11 }
   0x7   :  { %p931_p3 = por %p930_p2, %p929_p1 }
   0x9   :  { %p932_p4 = pnand %p931_p3, %p925_p0 }
   0xb   :  { %935 = shalt.err (!%p932_p4)
}
   0xc   :  { %s983_s12 = smov 128   ;;  %s984_s13 = smov 8  }
   0xd   :  { %21 = dma.hbm_to_vmem [thread:$0]  %s1150_s0, 2048, %s16_s10, [#allocation5], %s983_s12, %s983_s12, %s984_s13  }
   0xe   :  { %s985_s16 = smov [#allocation7]  }
   0xf   :  { %s27_s17 = sshll.u32 %s985_s16, 4  ;;  %s28_s17 = int_to_ptr.vmem [resolvable:$true] %s27_s17 }
  0x10   :  { %s944_s18 = scalar_lea.vmem %s28_s17, 2048  ;;  %p949_p6 = scmp.lt.s32.totalorder %s28_s17, %s28_s17 }
  0x11   :  { %p945_p5 = scmp.ne.s32.totalorder %s28_s17, %s944_s18  ;;  %p950_p7 = scmp.lt.s32.totalorder %s944_s18, %s944_s18 }
  0x13   :  { %p951_p8 = por %p950_p7, %p949_p6 }
  0x15   :  { %p952_p9 = pnand %p951_p8, %p945_p5 }
  0x17   :  { %955 = shalt.err (!%p952_p9)
}
  0x18   :  { %33 = dma.hbm_to_vmem [thread:$0]  %s1151_s1, 2048, %s28_s17, [#allocation8], %s983_s12, %s983_s12, %s984_s13  }
  0x19   :  { %976 = dma.done.wait [#allocation5], 2048  }
  0x1a   :  { %977 = vsyncadd [#allocation5], 4294965248 }
  0x1b   :  { %978 = dma.done.wait [#allocation8], 2048  }
  0x1c   :  { %979 = vsyncadd [#allocation8], 4294965248  ;;  %v986_v0 = vmov 0.0   ;;  %vm987_vm0 = vmmov 0   ;;  %v1020_v1 = vld [vmem:[#allocation4 + $0x10] sm:$0xff]  ;;  %v40_v2 = vld [vmem:[#allocation4] sm:$0xff] }
  0x1d   :  { %836 = vmatprep.subr.mxu1 %v986_v0  ;;  %868 = vmatprep.mubr.msk.f32.mxu1 %vm987_vm0, %v986_v0  ;;  %v1022_v3 = vld [vmem:[#allocation4 + $0x18] sm:$0xff]  ;;  %v219_v4 = vmul.f32 %v1020_v1, %v1020_v1  ;;  %v217_v5 = vmul.f32 %v40_v2, %v40_v2  ;;  %v1026_v6 = vld [vmem:[#allocation4 + $0x8] sm:$0xff]  ;;  %v70_v9 = vld [vmem:[#allocation7 + $0x70] sm:$0xff]  ;;  %v988_v54 = vmov 0   ;;  %vm371_vm1 = vcmask 7168   ;;  %s990_s0 = smov [#allocation9]  }
  0x1e   :  { %v71_v7 = vld [vmem:[#allocation7 + $0x78] sm:$0xff]  ;;  %812 = vmatprep.mubr.f32.mxu0 %v40_v2  ;;  %v220_v10 = vmul.f32 %v1022_v3, %v1022_v3  ;;  %v218_v11 = vmul.f32 %v1026_v6, %v1026_v6  ;;  %v1032_v12 = vld [vmem:[#allocation4 + $0x28] sm:$0xff]  ;;  %v279_v13 = vmul.f32 %v70_v9, %v70_v9  ;;  %v1034_v14 = vld [vmem:[#allocation4 + $0x20] sm:$0xff]  ;;  %880 = vset.pattern.permute.xlu0 %v988_v54  ;;  %s718_s1 = sshll.u32 %s990_s0, 4  ;;  %s719_s1 = int_to_ptr.vmem [resolvable:$true] %s718_s1 }
  0x1f   :  { %v280_v8 = vmul.f32 %v71_v7, %v71_v7  ;;  %780 = vmatprep.subr.mxu0 %v71_v7  ;;  %237 = vadd.xlane.f32.xlu1 %v219_v4  ;;  %v69_v15 = vld [vmem:[#allocation7 + $0x68] sm:$0xff]  ;;  %v222_v16 = vmul.f32 %v1032_v12, %v1032_v12  ;;  %v221_v17 = vmul.f32 %v1034_v14, %v1034_v14  ;;  %v1041_v18 = vld [vmem:[#allocation4 + $0x38] sm:$0xff]  ;;  %v1043_v20 = vld [vmem:[#allocation4 + $0x30] sm:$0xff]  ;;  %s956_s21 = scalar_lea.vmem %s719_s1, 2048  ;;  %p961_p11 = scmp.lt.s32.totalorder %s719_s1, %s719_s1 }
  0x20   :  { %233 = vadd.xlane.f32.xlu0 %v217_v5  ;;  %781 = vmatpush3.xpose.msra.mxu0 %v71_v7  ;;  %v278_v19 = vmul.f32 %v69_v15, %v69_v15  ;;  %v68_v21 = vld [vmem:[#allocation7 + $0x60] sm:$0xff]  ;;  %v224_v22 = vmul.f32 %v1041_v18, %v1041_v18  ;;  %v223_v23 = vmul.f32 %v1043_v20, %v1043_v20  ;;  %v1050_v24 = vld [vmem:[#allocation4 + $0x48] sm:$0xff]  ;;  %v67_v27 = vld [vmem:[#allocation7 + $0x58] sm:$0xff]  ;;  %v989_v5 = vmov 1.0   ;;  %p957_p10 = scmp.ne.s32.totalorder %s719_s1, %s956_s21  ;;  %p962_p12 = scmp.lt.s32.totalorder %s956_s21, %s956_s21 }
  0x21   :  { %837 = vmatpush3.xpose.msra.mxu1 %v280_v8  ;;  %782 = vmatprep.subr.mxu0 %v70_v9  ;;  %v277_v25 = vmul.f32 %v68_v21, %v68_v21  ;;  %v1052_v26 = vld [vmem:[#allocation4 + $0x40] sm:$0xff]  ;;  %v226_v28 = vmul.f32 %v1050_v24, %v1050_v24  ;;  %v1059_v30 = vld [vmem:[#allocation4 + $0x58] sm:$0xff]  ;;  %v276_v31 = vmul.f32 %v67_v27, %v67_v27  ;;  %v1061_v32 = vld [vmem:[#allocation4 + $0x50] sm:$0xff] }
  0x22   :  { %838 = vmatprep.subr.mxu1 %v986_v0  ;;  %v225_v29 = vmul.f32 %v1052_v26, %v1052_v26  ;;  %v66_v33 = vld [vmem:[#allocation7 + $0x50] sm:$0xff]  ;;  %v228_v34 = vmul.f32 %v1059_v30, %v1059_v30  ;;  %v227_v35 = vmul.f32 %v1061_v32, %v1061_v32  ;;  %v1068_v36 = vld [vmem:[#allocation4 + $0x68] sm:$0xff]  ;;  %v1070_v38 = vld [vmem:[#allocation4 + $0x60] sm:$0xff]  ;;  %881 = vset.pattern.permute.xlu1 %v988_v54  ;;  %p963_p13 = por %p962_p12, %p961_p11 }
  0x23   :  { %239 = vadd.xlane.f32.xlu1 %v220_v10  ;;  %v275_v37 = vmul.f32 %v66_v33, %v66_v33  ;;  %v65_v39 = vld [vmem:[#allocation7 + $0x48] sm:$0xff]  ;;  %v230_v40 = vmul.f32 %v1068_v36, %v1068_v36  ;;  %v229_v41 = vmul.f32 %v1070_v38, %v1070_v38  ;;  %v1077_v42 = vld [vmem:[#allocation4 + $0x78] sm:$0xff]  ;;  %v1079_v44 = vld [vmem:[#allocation4 + $0x70] sm:$0xff] }
  0x24   :  { %235 = vadd.xlane.f32.xlu0 %v218_v11  ;;  %783 = vmatpush3.xpose.msra.mxu0 %v70_v9  ;;  %v274_v43 = vmul.f32 %v65_v39, %v65_v39  ;;  %v64_v45 = vld [vmem:[#allocation7 + $0x40] sm:$0xff]  ;;  %v232_v46 = vmul.f32 %v1077_v42, %v1077_v42  ;;  %v231_v47 = vmul.f32 %v1079_v44, %v1079_v44  ;;  %v63_v49 = vld [vmem:[#allocation7 + $0x38] sm:$0xff]  ;;  %v62_v51 = vld [vmem:[#allocation7 + $0x30] sm:$0xff]  ;;  %p964_p0 = pnand %p963_p13, %p957_p10 }
  0x25   :  { %839 = vmatpush3.xpose.msra.mxu1 %v279_v13  ;;  %784 = vmatprep.subr.mxu0 %v69_v15  ;;  %v273_v48 = vmul.f32 %v64_v45, %v64_v45  ;;  %v272_v50 = vmul.f32 %v63_v49, %v63_v49  ;;  %v271_v52 = vmul.f32 %v62_v51, %v62_v51  ;;  %v61_v53 = vld [vmem:[#allocation7 + $0x28] sm:$0xff]  ;;  %v60_v56 = vld [vmem:[#allocation7 + $0x20] sm:$0xff]  ;;  %v59_v58 = vld [vmem:[#allocation7 + $0x18] sm:$0xff] }
  0x26   :  { %840 = vmatprep.subr.mxu1 %v986_v0  ;;  %v270_v55 = vmul.f32 %v61_v53, %v61_v53  ;;  %v269_v57 = vmul.f32 %v60_v56, %v60_v56  ;;  %v268_v59 = vmul.f32 %v59_v58, %v59_v58  ;;  %v58_v60 = vld [vmem:[#allocation7 + $0x10] sm:$0xff]  ;;  %v57_v62 = vld [vmem:[#allocation7 + $0x8] sm:$0xff]  ;;  %v56_v2 = vld [vmem:[#allocation7] sm:$0xff] }
  0x27   :  { %243 = vadd.xlane.f32.xlu1 %v222_v16  ;;  %v267_v61 = vmul.f32 %v58_v60, %v58_v60  ;;  %v266_v63 = vmul.f32 %v57_v62, %v57_v62  ;;  %v265_v4 = vmul.f32 %v56_v2, %v56_v2 }
  0x28   :  { %241 = vadd.xlane.f32.xlu0 %v221_v17  ;;  %785 = vmatpush3.xpose.msra.mxu0 %v69_v15 }
  0x29   :  { %841 = vmatpush3.xpose.msra.mxu1 %v278_v19  ;;  %786 = vmatprep.subr.mxu0 %v68_v21 }
  0x2a   :  { %842 = vmatprep.subr.mxu1 %v986_v0 }
  0x2b   :  { %247 = vadd.xlane.f32.xlu1 %v224_v22 }
  0x2c   :  { %245 = vadd.xlane.f32.xlu0 %v223_v23  ;;  %787 = vmatpush3.xpose.msra.mxu0 %v68_v21 }
  0x2d   :  { %843 = vmatpush3.xpose.msra.mxu1 %v277_v25  ;;  %788 = vmatprep.subr.mxu0 %v67_v27 }
  0x2e   :  { %844 = vmatprep.subr.mxu1 %v986_v0 }
  0x2f   :  { %251 = vadd.xlane.f32.xlu1 %v226_v28 }
  0x30   :  { %249 = vadd.xlane.f32.xlu0 %v225_v29  ;;  %789 = vmatpush3.xpose.msra.mxu0 %v67_v27 }
  0x31   :  { %845 = vmatpush3.xpose.msra.mxu1 %v276_v31  ;;  %790 = vmatprep.subr.mxu0 %v66_v33 }
  0x32   :  { %846 = vmatprep.subr.mxu1 %v986_v0 }
  0x33   :  { %255 = vadd.xlane.f32.xlu1 %v228_v34 }
  0x34   :  { %253 = vadd.xlane.f32.xlu0 %v227_v35  ;;  %791 = vmatpush3.xpose.msra.mxu0 %v66_v33 }
  0x35   :  { %847 = vmatpush3.xpose.msra.mxu1 %v275_v37  ;;  %792 = vmatprep.subr.mxu0 %v65_v39 }
  0x36   :  { %848 = vmatprep.subr.mxu1 %v986_v0 }
  0x37   :  { %259 = vadd.xlane.f32.xlu1 %v230_v40 }
  0x38   :  { %257 = vadd.xlane.f32.xlu0 %v229_v41  ;;  %793 = vmatpush3.xpose.msra.mxu0 %v65_v39 }
  0x39   :  { %849 = vmatpush3.xpose.msra.mxu1 %v274_v43  ;;  %794 = vmatprep.subr.mxu0 %v64_v45 }
  0x3a   :  { %850 = vmatprep.subr.mxu1 %v986_v0 }
  0x3b   :  { %263 = vadd.xlane.f32.xlu1 %v232_v46 }
  0x3c   :  { %261 = vadd.xlane.f32.xlu0 %v231_v47  ;;  %795 = vmatpush3.xpose.msra.mxu0 %v64_v45 }
  0x3d   :  { %851 = vmatpush3.xpose.msra.mxu1 %v273_v48  ;;  %796 = vmatprep.subr.mxu0 %v63_v49 }
  0x3e   :  { %852 = vmatprep.subr.mxu1 %v986_v0 }
  0x40   :  { %797 = vmatpush3.xpose.msra.mxu0 %v63_v49 }
  0x41   :  { %853 = vmatpush3.xpose.msra.mxu1 %v272_v50  ;;  %798 = vmatprep.subr.mxu0 %v62_v51 }
  0x42   :  { %854 = vmatprep.subr.mxu1 %v986_v0 }
  0x44   :  { %799 = vmatpush3.xpose.msra.mxu0 %v62_v51 }
  0x45   :  { %855 = vmatpush3.xpose.msra.mxu1 %v271_v52  ;;  %800 = vmatprep.subr.mxu0 %v61_v53 }
  0x46   :  { %856 = vmatprep.subr.mxu1 %v986_v0 }
  0x48   :  { %801 = vmatpush3.xpose.msra.mxu0 %v61_v53 }
  0x49   :  { %857 = vmatpush3.xpose.msra.mxu1 %v270_v55  ;;  %802 = vmatprep.subr.mxu0 %v60_v56 }
  0x4a   :  { %858 = vmatprep.subr.mxu1 %v986_v0 }
  0x4c   :  { %803 = vmatpush3.xpose.msra.mxu0 %v60_v56 }
  0x4d   :  { %859 = vmatpush3.xpose.msra.mxu1 %v269_v57  ;;  %804 = vmatprep.subr.mxu0 %v59_v58 }
  0x4e   :  { %860 = vmatprep.subr.mxu1 %v986_v0 }
  0x50   :  { %805 = vmatpush3.xpose.msra.mxu0 %v59_v58 }
  0x51   :  { %861 = vmatpush3.xpose.msra.mxu1 %v268_v59  ;;  %806 = vmatprep.subr.mxu0 %v58_v60 }
  0x52   :  { %862 = vmatprep.subr.mxu1 %v986_v0 }
  0x54   :  { %807 = vmatpush3.xpose.msra.mxu0 %v58_v60 }
  0x55   :  { %863 = vmatpush3.xpose.msra.mxu1 %v267_v61  ;;  %808 = vmatprep.subr.mxu0 %v57_v62 }
  0x56   :  { %864 = vmatprep.subr.mxu1 %v986_v0 }
  0x58   :  { %809 = vmatpush3.xpose.msra.mxu0 %v57_v62 }
  0x59   :  { %865 = vmatpush3.xpose.msra.mxu1 %v266_v63  ;;  %810 = vmatprep.subr.mxu0 %v56_v2 }
  0x5a   :  { %866 = vmatprep.subr.mxu1 %v986_v0 }
  0x5c   :  { %811 = vmatpush3.xpose.msra.mxu0 %v56_v2 }
  0x5d   :  { %867 = vmatpush3.xpose.msra.mxu1 %v265_v4 }
  0x5f   :  { %813 = vmatmul.mubr.f32.vlgmr.msra.gmra.mxu0 %v1026_v6 }
  0x60   :  { %869 = vmatmul.mubr.f32.vlgmr.msra.gmra.mxu1 %v989_v5  ;;  %815 = vmatprep.mubr.f32.mxu0 %v1020_v1 }
  0x63   :  { %816 = vmatmul.mubr.f32.gmra.mxu0 %v1022_v3 }
  0x64   :  { %818 = vmatprep.mubr.f32.mxu0 %v1034_v14 }
  0x67   :  { %819 = vmatmul.mubr.f32.gmra.mxu0 %v1032_v12 }
  0x68   :  { %821 = vmatprep.mubr.f32.mxu0 %v1043_v20 }
  0x6b   :  { %822 = vmatmul.mubr.f32.gmra.mxu0 %v1041_v18 }
  0x6c   :  { %824 = vmatprep.mubr.f32.mxu0 %v1052_v26 }
  0x6f   :  { %825 = vmatmul.mubr.f32.gmra.mxu0 %v1050_v24 }
  0x70   :  { %827 = vmatprep.mubr.f32.mxu0 %v1061_v32 }
  0x73   :  { %828 = vmatmul.mubr.f32.gmra.mxu0 %v1059_v30 }
  0x74   :  { %830 = vmatprep.mubr.f32.mxu0 %v1070_v38 }
  0x77   :  { %831 = vmatmul.mubr.f32.gmra.mxu0 %v1068_v36 }
  0x78   :  { %833 = vmatprep.mubr.f32.mxu0 %v1079_v44 }
  0x7b   :  { %834 = vmatmul.mubr.f32.gmra.mxu0 %v1077_v42 }
  0xa8   :  { %v238_v0 = vpop.xlane.xlu1 %237 }
  0xa9   :  { %v234_v1 = vpop.xlane.xlu0 %233  ;;  %374 = vst.msk [vmem:[#allocation2 + $0x10] sm:$0xff] %vm371_vm1, %v238_v0 }
  0xaa   :  { %372 = vst.msk [vmem:[#allocation2] sm:$0xff] %vm371_vm1, %v234_v1 }
  0xac   :  { %v240_v3 = vpop.xlane.xlu1 %239 }
  0xad   :  { %v236_v6 = vpop.xlane.xlu0 %235  ;;  %375 = vst.msk [vmem:[#allocation2 + $0x18] sm:$0xff] %vm371_vm1, %v240_v3 }
  0xae   :  { %373 = vst.msk [vmem:[#allocation2 + $0x8] sm:$0xff] %vm371_vm1, %v236_v6 }
  0xb0   :  { %v244_v7 = vpop.xlane.xlu1 %243  ;;  %v498_v10 = vld [vmem:[#allocation2 + $0x10] sm:$0xff] }
  0xb1   :  { %v242_v8 = vpop.xlane.xlu0 %241  ;;  %v496_v9 = vld [vmem:[#allocation2] sm:$0xff]  ;;  %377 = vst.msk [vmem:[#allocation2 + $0x28] sm:$0xff] %vm371_vm1, %v244_v7  ;;  %v514_v12 = vmax.f32 %v498_v10, 1e-16 }
  0xb2   :  { %376 = vst.msk [vmem:[#allocation2 + $0x20] sm:$0xff] %vm371_vm1, %v242_v8  ;;  %v512_v11 = vmax.f32 %v496_v9, 1e-16 }
  0xb4   :  { %882 = vrsqrt.f32 %v512_v11  ;;  %v248_v13 = vpop.xlane.xlu1 %247  ;;  %v499_v16 = vld [vmem:[#allocation2 + $0x18] sm:$0xff] }
  0xb5   :  { %v246_v14 = vpop.xlane.xlu0 %245  ;;  %v497_v15 = vld [vmem:[#allocation2 + $0x8] sm:$0xff]  ;;  %379 = vst.msk [vmem:[#allocation2 + $0x38] sm:$0xff] %vm371_vm1, %v248_v13  ;;  %884 = vrsqrt.f32 %v514_v12  ;;  %v515_v18 = vmax.f32 %v499_v16, 1e-16 }
  0xb6   :  { %378 = vst.msk [vmem:[#allocation2 + $0x30] sm:$0xff] %vm371_vm1, %v246_v14  ;;  %v513_v17 = vmax.f32 %v497_v15, 1e-16 }
  0xb8   :  { %886 = vrsqrt.f32 %v513_v17  ;;  %v252_v19 = vpop.xlane.xlu1 %251  ;;  %v501_v23 = vld [vmem:[#allocation2 + $0x28] sm:$0xff] }
  0xb9   :  { %v250_v20 = vpop.xlane.xlu0 %249  ;;  %v500_v21 = vld [vmem:[#allocation2 + $0x20] sm:$0xff]  ;;  %381 = vst.msk [vmem:[#allocation2 + $0x48] sm:$0xff] %vm371_vm1, %v252_v19  ;;  %888 = vrsqrt.f32 %v515_v18  ;;  %v517_v26 = vmax.f32 %v501_v23, 1e-16 }
  0xba   :  { %380 = vst.msk [vmem:[#allocation2 + $0x40] sm:$0xff] %vm371_vm1, %v250_v20  ;;  %v516_v22 = vmax.f32 %v500_v21, 1e-16 }
  0xbc   :  { %v256_v24 = vpop.xlane.xlu1 %255  ;;  %890 = vrsqrt.f32 %v516_v22  ;;  %v503_v36 = vld [vmem:[#allocation2 + $0x38] sm:$0xff] }
  0xbd   :  { %v254_v25 = vpop.xlane.xlu0 %253  ;;  %383 = vst.msk [vmem:[#allocation2 + $0x58] sm:$0xff] %vm371_vm1, %v256_v24  ;;  %v502_v27 = vld [vmem:[#allocation2 + $0x30] sm:$0xff]  ;;  %892 = vrsqrt.f32 %v517_v26  ;;  %v519_v43 = vmax.f32 %v503_v36, 1e-16 }
  0xbe   :  { %382 = vst.msk [vmem:[#allocation2 + $0x50] sm:$0xff] %vm371_vm1, %v254_v25  ;;  %v518_v34 = vmax.f32 %v502_v27, 1e-16 }
  0xc0   :  { %v260_v29 = vpop.xlane.xlu1 %259  ;;  %v505_v31 = vld [vmem:[#allocation2 + $0x48] sm:$0xff] }
  0xc1   :  { %v883_v28 = vpop.eup %882  ;;  %v258_v30 = vpop.xlane.xlu0 %257  ;;  %385 = vst.msk [vmem:[#allocation2 + $0x68] sm:$0xff] %vm371_vm1, %v260_v29  ;;  %v521_v33 = vmax.f32 %v505_v31, 1e-16  ;;  %v504_v45 = vld [vmem:[#allocation2 + $0x40] sm:$0xff] }
  0xc2   :  { %v544_v32 = vmul.f32 20.0, %v883_v28  ;;  %384 = vst.msk [vmem:[#allocation2 + $0x60] sm:$0xff] %vm371_vm1, %v258_v30  ;;  %v885_v35 = vpop.eup %884  ;;  %v520_v49 = vmax.f32 %v504_v45, 1e-16  ;;  %v676_v28 = vlaneseq }
  0xc3   :  { %894 = vrsqrt.f32 %v521_v33  ;;  %v546_v44 = vmul.f32 20.0, %v885_v35 }
  0xc4   :  { %581 = vperm.xlu0 %880, %v544_v32   ;;  %v264_v38 = vpop.xlane.xlu1 %263  ;;  %v507_v40 = vld [vmem:[#allocation2 + $0x58] sm:$0xff]  ;;  %896 = vrsqrt.f32 %v518_v34  ;;  %v677_v30 = vshrl.u32 %v676_v28, 7 }
  0xc5   :  { %v887_v37 = vpop.eup %886  ;;  %v262_v39 = vpop.xlane.xlu0 %261  ;;  %387 = vst.msk [vmem:[#allocation2 + $0x78] sm:$0xff] %vm371_vm1, %v264_v38  ;;  %v523_v42 = vmax.f32 %v507_v40, 1e-16  ;;  %v506_v53 = vld [vmem:[#allocation2 + $0x50] sm:$0xff] }
  0xc6   :  { %v545_v41 = vmul.f32 20.0, %v887_v37  ;;  %386 = vst.msk [vmem:[#allocation2 + $0x70] sm:$0xff] %vm371_vm1, %v262_v39  ;;  %v889_v46 = vpop.eup %888  ;;  %v522_v57 = vmax.f32 %v506_v53, 1e-16  ;;  %v678_v32 = vsub.s32 0, %v677_v30 }
  0xc7   :  { %898 = vrsqrt.f32 %v523_v42  ;;  %v547_v50 = vmul.f32 20.0, %v889_v46 }
  0xc8   :  { %586 = vperm.xlu1 %881, %v545_v41   ;;  %v509_v47 = vld [vmem:[#allocation2 + $0x68] sm:$0xff]  ;;  %900 = vrsqrt.f32 %v519_v43 }
  0xc9   :  { %v525_v48 = vmax.f32 %v509_v47, 1e-16  ;;  %v891_v51 = vpop.eup %890  ;;  %v508_v59 = vld [vmem:[#allocation2 + $0x60] sm:$0xff] }
  0xca   :  { %v893_v55 = vpop.eup %892  ;;  %v548_v56 = vmul.f32 20.0, %v891_v51  ;;  %v524_v63 = vmax.f32 %v508_v59, 1e-16 }
  0xcb   :  { %902 = vrsqrt.f32 %v525_v48  ;;  %v549_v62 = vmul.f32 20.0, %v893_v55 }
  0xcc   :  { %591 = vperm.xlu1 %881, %v546_v44   ;;  %v511_v52 = vld [vmem:[#allocation2 + $0x78] sm:$0xff]  ;;  %904 = vrsqrt.f32 %v520_v49 }
  0xcd   :  { %v527_v54 = vmax.f32 %v511_v52, 1e-16  ;;  %v510_v4 = vld [vmem:[#allocation2 + $0x70] sm:$0xff] }
  0xce   :  { %v526_v3 = vmax.f32 %v510_v4, 1e-16 }
  0xcf   :  { %906 = vrsqrt.f32 %v527_v54 }
  0xd0   :  { %596 = vperm.xlu1 %881, %v547_v50   ;;  %v895_v58 = vpop.eup %894  ;;  %908 = vrsqrt.f32 %v522_v57 }
  0xd1   :  { %v553_v60 = vmul.f32 20.0, %v895_v58  ;;  %v897_v61 = vpop.eup %896  ;;  %910 = vrsqrt.f32 %v524_v63 }
  0xd2   :  { %v550_v1 = vmul.f32 20.0, %v897_v61  ;;  %912 = vrsqrt.f32 %v526_v3 }
  0xd3   :  { %626 = vperm.xlu0 %880, %v553_v60  }
  0xd4   :  { %601 = vperm.xlu1 %881, %v548_v56   ;;  %v899_v2 = vpop.eup %898 }
  0xd5   :  { %v555_v5 = vmul.f32 20.0, %v899_v2  ;;  %v901_v0 = vpop.eup %900 }
  0xd6   :  { %v551_v9 = vmul.f32 20.0, %v901_v0 }
  0xd7   :  { %636 = vperm.xlu0 %880, %v555_v5  }
  0xd8   :  { %606 = vperm.xlu1 %881, %v549_v62   ;;  %v903_v6 = vpop.eup %902 }
  0xd9   :  { %v557_v7 = vmul.f32 20.0, %v903_v6  ;;  %v905_v8 = vpop.eup %904 }
  0xda   :  { %v552_v12 = vmul.f32 20.0, %v905_v8 }
  0xdb   :  { %646 = vperm.xlu0 %880, %v557_v7  }
  0xdc   :  { %611 = vperm.xlu1 %881, %v550_v1   ;;  %v907_v10 = vpop.eup %906 }
  0xdd   :  { %v559_v11 = vmul.f32 20.0, %v907_v10  ;;  %v909_v13 = vpop.eup %908 }
  0xde   :  { %v554_v14 = vmul.f32 20.0, %v909_v13  ;;  %v911_v15 = vpop.eup %910 }
  0xdf   :  { %656 = vperm.xlu0 %880, %v559_v11   ;;  %v556_v16 = vmul.f32 20.0, %v911_v15  ;;  %v913_v17 = vpop.eup %912 }
  0xe0   :  { %616 = vperm.xlu1 %881, %v551_v9   ;;  %v558_v18 = vmul.f32 20.0, %v913_v17 }
  0xe4   :  { %621 = vperm.xlu1 %881, %v552_v12  }
  0xe8   :  { %631 = vperm.xlu1 %881, %v554_v14  }
  0xec   :  { %641 = vperm.xlu1 %881, %v556_v16  }
  0xf0   :  { %651 = vperm.xlu1 %881, %v558_v18  }
 0x11f   :  { %v814_v21 = vpop.f32.mrf.mxu0 }
 0x120   :  { %v347_v19 = vpop.f32.mrf.mxu1 }
 0x121   :  { %388 = vst [vmem:[#allocation3] sm:$0x1] %v347_v19  ;;  %v138_v22 = vpop.f32.mrf.mxu0 }
 0x122   :  { %v870_v20 = vpop.f32.mrf.mxu1 }
 0x123   :  { %v817_v24 = vpop.f32.mrf.mxu0 }
 0x125   :  { %v148_v26 = vpop.f32.mrf.mxu0 }
 0x127   :  { %v820_v27 = vpop.f32.mrf.mxu0 }
 0x128   :  { %v560_v23 = vld [vmem:[#allocation3] sm:$0x1] }
 0x129   :  { %v561_v25 = vmax.f32 %v560_v23, 1e-16  ;;  %v158_v29 = vpop.f32.mrf.mxu0 }
 0x12b   :  { %914 = vrsqrt.f32 %v561_v25  ;;  %v823_v31 = vpop.f32.mrf.mxu0 }
 0x12d   :  { %v168_v34 = vpop.f32.mrf.mxu0 }
 0x12f   :  { %v826_v38 = vpop.f32.mrf.mxu0 }
 0x131   :  { %v178_v42 = vpop.f32.mrf.mxu0 }
 0x133   :  { %v829_v46 = vpop.f32.mrf.mxu0 }
 0x135   :  { %v188_v50 = vpop.f32.mrf.mxu0 }
 0x137   :  { %v832_v56 = vpop.f32.mrf.mxu0 }
 0x138   :  { %v915_v33 = vpop.eup %914 }
 0x139   :  { %v1126_v35 = vrot.slane %v915_v33, %v678_v32  ;;  %v198_v63 = vpop.f32.mrf.mxu0 }
 0x13b   :  { %v835_v6 = vpop.f32.mrf.mxu0 }
 0x13f   :  { %v582_v36 = vpop.permute.xlu0 %581 }
 0x140   :  { %v659_v37 = vmul.f32 %v582_v36, %v138_v22 }
 0x142   :  { %v681_v39 = vmul.f32 %v1126_v35, %v659_v37 }
 0x143   :  { %v587_v40 = vpop.permute.xlu1 %586 }
 0x144   :  { %697 = vst [vmem:[#allocation9] sm:$0xff] %v681_v39  ;;  %v660_v41 = vmul.f32 %v814_v21, %v587_v40 }
 0x146   :  { %v682_v43 = vmul.f32 %v1126_v35, %v660_v41 }
 0x147   :  { %v592_v44 = vpop.permute.xlu1 %591 }
 0x148   :  { %698 = vst [vmem:[#allocation9 + $0x8] sm:$0xff] %v682_v43  ;;  %v661_v45 = vmul.f32 %v592_v44, %v148_v26 }
 0x14a   :  { %v683_v47 = vmul.f32 %v1126_v35, %v661_v45 }
 0x14b   :  { %v597_v48 = vpop.permute.xlu1 %596 }
 0x14c   :  { %699 = vst [vmem:[#allocation9 + $0x10] sm:$0xff] %v683_v47  ;;  %v662_v49 = vmul.f32 %v817_v24, %v597_v48  ;;  %v208_v24 = vpop.f32.mrf.mxu0 }
 0x14e   :  { %v684_v51 = vmul.f32 %v1126_v35, %v662_v49  ;;  %v627_v53 = vpop.permute.xlu0 %626 }
 0x14f   :  { %v602_v52 = vpop.permute.xlu1 %601  ;;  %v668_v55 = vmul.f32 %v826_v38, %v627_v53 }
 0x150   :  { %700 = vst [vmem:[#allocation9 + $0x18] sm:$0xff] %v684_v51  ;;  %v663_v54 = vmul.f32 %v602_v52, %v158_v29 }
 0x151   :  { %v690_v58 = vmul.f32 %v1126_v35, %v668_v55 }
 0x152   :  { %v685_v57 = vmul.f32 %v1126_v35, %v663_v54  ;;  %v637_v60 = vpop.permute.xlu0 %636 }
 0x153   :  { %v607_v59 = vpop.permute.xlu1 %606  ;;  %706 = vst [vmem:[#allocation9 + $0x48] sm:$0xff] %v690_v58  ;;  %v670_v62 = vmul.f32 %v829_v46, %v637_v60 }
 0x154   :  { %701 = vst [vmem:[#allocation9 + $0x20] sm:$0xff] %v685_v57  ;;  %v664_v61 = vmul.f32 %v820_v27, %v607_v59 }
 0x155   :  { %v692_v4 = vmul.f32 %v1126_v35, %v670_v62 }
 0x156   :  { %v686_v2 = vmul.f32 %v1126_v35, %v664_v61  ;;  %v647_v0 = vpop.permute.xlu0 %646 }
 0x157   :  { %v612_v5 = vpop.permute.xlu1 %611  ;;  %708 = vst [vmem:[#allocation9 + $0x58] sm:$0xff] %v692_v4  ;;  %v672_v3 = vmul.f32 %v832_v56, %v647_v0 }
 0x158   :  { %702 = vst [vmem:[#allocation9 + $0x28] sm:$0xff] %v686_v2  ;;  %v665_v1 = vmul.f32 %v612_v5, %v168_v34 }
 0x159   :  { %v694_v8 = vmul.f32 %v1126_v35, %v672_v3 }
 0x15a   :  { %v687_v7 = vmul.f32 %v1126_v35, %v665_v1  ;;  %v657_v10 = vpop.permute.xlu0 %656 }
 0x15b   :  { %v617_v9 = vpop.permute.xlu1 %616  ;;  %710 = vst [vmem:[#allocation9 + $0x68] sm:$0xff] %v694_v8  ;;  %v674_v12 = vmul.f32 %v835_v6, %v657_v10 }
 0x15c   :  { %703 = vst [vmem:[#allocation9 + $0x30] sm:$0xff] %v687_v7  ;;  %v666_v11 = vmul.f32 %v823_v31, %v617_v9 }
 0x15d   :  { %v696_v14 = vmul.f32 %v1126_v35, %v674_v12 }
 0x15e   :  { %v688_v13 = vmul.f32 %v1126_v35, %v666_v11 }
 0x15f   :  { %v622_v15 = vpop.permute.xlu1 %621  ;;  %712 = vst [vmem:[#allocation9 + $0x78] sm:$0xff] %v696_v14 }
 0x160   :  { %704 = vst [vmem:[#allocation9 + $0x38] sm:$0xff] %v688_v13  ;;  %v667_v16 = vmul.f32 %v622_v15, %v178_v42 }
 0x162   :  { %v689_v17 = vmul.f32 %v1126_v35, %v667_v16 }
 0x163   :  { %v632_v18 = vpop.permute.xlu1 %631 }
 0x164   :  { %705 = vst [vmem:[#allocation9 + $0x40] sm:$0xff] %v689_v17  ;;  %v669_v19 = vmul.f32 %v632_v18, %v188_v50 }
 0x166   :  { %v691_v20 = vmul.f32 %v1126_v35, %v669_v19 }
 0x167   :  { %v642_v21 = vpop.permute.xlu1 %641 }
 0x168   :  { %707 = vst [vmem:[#allocation9 + $0x50] sm:$0xff] %v691_v20  ;;  %v671_v22 = vmul.f32 %v642_v21, %v198_v63 }
 0x16a   :  { %v693_v23 = vmul.f32 %v1126_v35, %v671_v22 }
 0x16b   :  { %v652_v25 = vpop.permute.xlu1 %651 }
 0x16c   :  { %709 = vst [vmem:[#allocation9 + $0x60] sm:$0xff] %v693_v23  ;;  %v673_v26 = vmul.f32 %v652_v25, %v208_v24 }
 0x16e   :  { %v695_v27 = vmul.f32 %v1126_v35, %v673_v26 }
 0x170   :  { %711 = vst [vmem:[#allocation9 + $0x70] sm:$0xff] %v695_v27 }
 0x171   :  { %967 = shalt.err (!%p964_p0)
}
 0x172   :  { %724 = dma.vmem_to_hbm [thread:$0]  %s719_s1, 2048, %s1152_s2, [#allocation6], %s983_s12, %s983_s12, %s984_s13  }
 0x173   :  { %980 = dma.done.wait [#allocation6], 2048  }
 0x174   :  { %981 = vsyncadd [#allocation6], 4294965248 }
 0x175   :  { %728 = vsyncpa [#allocation5], 1 }
 0x176   :  { %729 = vsyncpa [#allocation8], 1 }
 0x177   :  { %730 = vsyncpa [#allocation6], 1 }

</bundles_post_ra>
